<compile_context>
chip_gen: v7x
topology: tpu7x:2x2x1
jax: 0.10.0
libtpu: 0.0.40
codegen_flags: <defaults>
</compile_context>

<pallas_src>
import functools

import jax
import jax.numpy as jnp
from jax import lax
from jax.experimental import pallas as pl
from jax.experimental.pallas import tpu as pltpu

LANE = 128
SUB = 8
CHUNK_ROWS = 64            # inner-loop chunk: 64x128 f32 = 8 vregs per stream
DEFAULT_TILE_ROWS = 4096   # per grid step per input: <= 2 MiB


def _cdiv(a, b):
    return -(-a // b)


def _round_up(x, m):
    return _cdiv(x, m) * m


def _choose_layout(n, tile_rows):
    """Returns (nparts, blocks_per_part, tile_rows, chunk_rows)."""
    rows = max(1, _cdiv(n, LANE))
    chunk = CHUNK_ROWS if rows >= CHUNK_ROWS else SUB
    nblocks = max(1, _cdiv(rows, tile_rows))
    # Two-way split of the outer ("parallel") grid axis when there is enough
    # work: a serial no-op on v5e/v6e (1 TC), ~2x HBM streams on v7x (2 TCs).
    nparts = 2 if nblocks >= 2 else 1
    nblocks = _round_up(nblocks, nparts)
    tr = _round_up(_cdiv(rows, nblocks), chunk)
    return nparts, nblocks // nparts, tr, chunk


def _loss_reduce_kernel(p_ref, t_ref, acc_ref, *, tile_rows, chunk_rows):
    """Accumulates [sum(-bce), sum(p*t), sum(p), sum(t)] into acc_ref."""
    blk = pl.program_id(1)

    @pl.when(blk == 0)
    def _():
        acc_ref[...] = jnp.zeros_like(acc_ref)

    nchunks = tile_rows // chunk_rows
    zeros = jnp.zeros((SUB, LANE), jnp.float32)

    def fold(x):
        # (chunk, 128) -> (chunk//8, 8, 128) summed over the leading (vreg)
        # axis: pure VPU adds, keeps only a handful of vregs live.
        return jnp.sum(x.reshape(chunk_rows // SUB, SUB, LANE), axis=0)

    def body(c, carry):
        nbce_a, pt_a, ps_a, ts_a = carry
        off = pl.multiple_of(c * chunk_rows, chunk_rows)
        p = p_ref[pl.ds(off, chunk_rows), :].astype(jnp.float32)
        t = t_ref[pl.ds(off, chunk_rows), :].astype(jnp.float32)
        # PyTorch nn.BCELoss clamps the log terms at -100, so zero padding
        # (p = t = 0) contributes exactly 0 to every partial sum below.
        log_p = jnp.maximum(jnp.log(p), -100.0)
        log_1mp = jnp.maximum(jnp.log(1.0 - p), -100.0)
        nbce = t * (log_p - log_1mp) + log_1mp          # == -BCE per element
        return (nbce_a + fold(nbce), pt_a + fold(p * t),
                ps_a + fold(p), ts_a + fold(t))

    nbce, pt, ps, ts = lax.fori_loop(0, nchunks, body,
                                     (zeros, zeros, zeros, zeros))
    acc_ref[0] += nbce
    acc_ref[1] += pt
    acc_ref[2] += ps
    acc_ref[3] += ts


def _run_reduction(probs, targets, tile_rows=DEFAULT_TILE_ROWS,
                   narrow_targets=True):
    """Returns (sum(-bce), sum(p*t), sum(p), sum(t), n)."""
    p = probs.reshape(-1)
    t = targets.reshape(-1)
    if (narrow_targets and jnp.issubdtype(t.dtype, jnp.floating)
            and t.dtype.itemsize >= 4):
        # Exact for 0/1 masks; cuts HBM traffic from 8 to 6 bytes/element.
        t = t.astype(jnp.bfloat16)
    n = p.shape[0]

    nparts, bpp, tr, chunk = _choose_layout(n, tile_rows)
    rows_padded = nparts * bpp * tr
    pad = rows_padded * LANE - n
    if pad:
        p = jnp.pad(p, (0, pad))
        t = jnp.pad(t, (0, pad))
    P = p.reshape(rows_padded, LANE)
    T = t.reshape(rows_padded, LANE)

    kernel = functools.partial(_loss_reduce_kernel,
                               tile_rows=tr, chunk_rows=chunk)

    in_spec = pl.BlockSpec((tr, LANE), lambda part, blk: (part * bpp + blk, 0))
    out_spec = pl.BlockSpec((None, 4, SUB, LANE),
                            lambda part, blk: (part, 0, 0, 0))

    n_pad = rows_padded * LANE
    cost = pl.CostEstimate(
        flops=10 * n_pad,
        transcendentals=2 * n_pad,
        bytes_accessed=(P.size * P.dtype.itemsize
                        + T.size * T.dtype.itemsize
                        + nparts * 4 * SUB * LANE * 4))

    acc = pl.pallas_call(
        kernel,
        out_shape=jax.ShapeDtypeStruct((nparts, 4, SUB, LANE), jnp.float32),
        grid=(nparts, bpp),
        in_specs=[in_spec, in_spec],
        out_specs=out_spec,
        compiler_params=pltpu.CompilerParams(
            dimension_semantics=("parallel", "arbitrary")),
        cost_estimate=cost,
    )(P, T)

    totals = jnp.sum(acc, axis=(0, 2, 3))   # tiny cross-lane reduce in XLA
    return totals[0], totals[1], totals[2], totals[3], n


@functools.partial(jax.jit, static_argnames=("is_dice_log",))
def combined_loss(probs, targets, is_dice_log=True):
    """Matches CombinedLoss.forward: returns (l, bce_loss, dice_loss)."""
    nbce_sum, inter, psum, tsum, n = _run_reduction(probs, targets)

    bce_loss = -nbce_sum / jnp.float32(n)

    smooth = jnp.float32(1e-05)
    score = (2.0 * inter + smooth) / (psum + tsum + smooth)
    dice_loss = -score

    if is_dice_log:
        l = bce_loss - jnp.log(-dice_loss)
    else:
        l = bce_loss + dice_loss
    return l, bce_loss, dice_loss


def _reference(probs, targets, is_dice_log=True):
    pf = probs.reshape(-1).astype(jnp.float32)
    tf = targets.reshape(-1).astype(jnp.float32)
    ref_bce = -jnp.mean(tf * jnp.maximum(jnp.log(pf), -100.0)
                        + (1.0 - tf) * jnp.maximum(jnp.log(1.0 - pf), -100.0))
    ref_score = (2.0 * jnp.dot(pf, tf) + 1e-5) / (jnp.sum(pf) + jnp.sum(tf) + 1e-5)
    ref_dice = -ref_score
    ref_l = ref_bce - jnp.log(ref_score) if is_dice_log else ref_bce + ref_dice
    return ref_l, ref_bce, ref_dice


if __name__ == "__main__":
    key = jax.random.PRNGKey(0)
    k1, k2, k3, k4 = jax.random.split(key, 4)

    # Test 1: small NCHW shape, total elements a multiple of 128 (no padding).
    shape = (2, 4, 16, 16)
    probs = jax.nn.sigmoid(jax.random.normal(k1, shape, jnp.float32))
    targets = (jax.random.uniform(k2, shape) > 0.5).astype(jnp.float32)

    l, bce, dice = combined_loss(probs, targets, is_dice_log=True)
    jax.block_until_ready((l, bce, dice))
    ref_l, ref_bce, ref_dice = _reference(probs, targets, True)
    assert jnp.allclose(bce, ref_bce, rtol=1e-5, atol=1e-6)
    assert jnp.allclose(dice, ref_dice, rtol=1e-5, atol=1e-6)
    assert jnp.allclose(l, ref_l, rtol=1e-5, atol=1e-6)

    # is_dice_log=False branch.
    l0, bce0, dice0 = combined_loss(probs, targets, is_dice_log=False)
    jax.block_until_ready((l0, bce0, dice0))
    ref_l0, _, _ = _reference(probs, targets, False)
    assert jnp.allclose(l0, ref_l0, rtol=1e-5, atol=1e-6)

    # Test 2: ragged element count (exercises the zero-padding path).
    shape2 = (1, 3, 17, 19)   # 969 elements, not a multiple of 128
    probs2 = jax.nn.sigmoid(jax.random.normal(k3, shape2, jnp.float32))
    targets2 = (jax.random.uniform(k4, shape2) > 0.5).astype(jnp.float32)

    l2, bce2, dice2 = combined_loss(probs2, targets2, is_dice_log=True)
    jax.block_until_ready((l2, bce2, dice2))
    ref_l2, ref_bce2, ref_dice2 = _reference(probs2, targets2, True)
    assert jnp.allclose(bce2, ref_bce2, rtol=1e-5, atol=1e-6)
    assert jnp.allclose(dice2, ref_dice2, rtol=1e-5, atol=1e-6)
    assert jnp.allclose(l2, ref_l2, rtol=1e-5, atol=1e-6)

    print("KERNEL_OK")
</pallas_src>

<mosaic_0001>
module attributes {stable_mosaic.version = 11 : i64} {
  func.func @_loss_reduce_kernel(%arg0: i32, %arg1: i32, %arg2: memref<16x128xf32, #tpu.memory_space<vmem>>, %arg3: memref<16x128xbf16, #tpu.memory_space<vmem>>, %arg4: memref<1x4x8x128xf32, #tpu.memory_space<vmem>>) attributes {dimension_semantics = [#tpu.dimension_semantics<parallel>, #tpu.dimension_semantics<arbitrary>], iteration_bounds = array<i64: 1, 1>, scalar_prefetch = 0 : i64, scratch_operands = 0 : i64, tpu.core_type = #tpu.core_type<tc>, window_params = [{transform_indices = @transform_0, window_bounds = array<i64: 16, 128>}, {transform_indices = @transform_1, window_bounds = array<i64: 16, 128>}, {transform_indices = @transform_2, window_bounds = array<i64: 1, 4, 8, 128>}]} {
    %c0_i32 = arith.constant 0 : i32
    %0 = arith.cmpi eq, %arg1, %c0_i32 : i32
    %1 = arith.extui %0 : i1 to i32
    %c0_i32_0 = arith.constant 0 : i32
    %2 = arith.cmpi ne, %1, %c0_i32_0 : i32
    scf.if %2 {
      %cst_31 = arith.constant 0.000000e+00 : f32
      %30 = vector.broadcast %cst_31 : f32 to vector<4x8x128xf32>
      %c0_32 = arith.constant 0 : index
      %c0_33 = arith.constant 0 : index
      %c0_34 = arith.constant 0 : index
      %c0_35 = arith.constant 0 : index
      %31 = vector.load %arg4[%c0_32, %c0_33, %c0_34, %c0_35] : memref<1x4x8x128xf32, #tpu.memory_space<vmem>>, vector<1x4x8x128xf32>
      %32 = vector.shape_cast %31 : vector<1x4x8x128xf32> to vector<4x8x128xf32>
      %33 = vector.shape_cast %30 : vector<4x8x128xf32> to vector<1x4x8x128xf32>
      tpu.vector_store %arg4[%c0_32, %c0_33, %c0_34, %c0_35], %33 {strides = array<i32>} : memref<1x4x8x128xf32, #tpu.memory_space<vmem>>, vector<1x4x8x128xf32>,
    } else {
    }
    %cst = arith.constant 0.000000e+00 : f32
    %3 = vector.broadcast %cst : f32 to vector<8x128xf32>
    %c0_i32_1 = arith.constant 0 : i32
    %c2_i32 = arith.constant 2 : i32
    %4 = arith.addi %c0_i32_1, %c2_i32 : i32
    %c1_i32 = arith.constant 1 : i32
    %5:4 = scf.for %arg5 = %c0_i32_1 to %4 step %c1_i32 iter_args(%arg6 = %3, %arg7 = %3, %arg8 = %3, %arg9 = %3) -> (vector<8x128xf32>, vector<8x128xf32>, vector<8x128xf32>, vector<8x128xf32>)  : i32 {
      %c8_i32 = arith.constant 8 : i32
      %30 = arith.muli %arg5, %c8_i32 : i32
      %31 = tpu.assume_multiple %30, 8 : i32
      %32 = arith.index_cast %31 : i32 to index
      %c0_31 = arith.constant 0 : index
      %33 = vector.load %arg2[%32, %c0_31] : memref<16x128xf32, #tpu.memory_space<vmem>>, vector<8x128xf32>
      %34 = arith.index_cast %31 : i32 to index
      %c0_32 = arith.constant 0 : index
      %35 = vector.load %arg3[%34, %c0_32] : memref<16x128xbf16, #tpu.memory_space<vmem>>, vector<8x128xbf16>
      %36 = arith.extf %35 : vector<8x128xbf16> to vector<8x128xf32>
      %37 = math.log %33 : vector<8x128xf32>
      %cst_33 = arith.constant -1.000000e+02 : f32
      %38 = vector.broadcast %cst_33 : f32 to vector<8x128xf32>
      %39 = arith.maximumf %37, %38 : vector<8x128xf32>
      %cst_34 = arith.constant 1.000000e+00 : f32
      %40 = vector.broadcast %cst_34 : f32 to vector<8x128xf32>
      %41 = arith.subf %40, %33 : vector<8x128xf32>
      %42 = math.log %41 : vector<8x128xf32>
      %cst_35 = arith.constant -1.000000e+02 : f32
      %43 = vector.broadcast %cst_35 : f32 to vector<8x128xf32>
      %44 = arith.maximumf %42, %43 : vector<8x128xf32>
      %45 = arith.subf %39, %44 : vector<8x128xf32>
      %46 = arith.mulf %36, %45 : vector<8x128xf32>
      %47 = arith.addf %46, %44 : vector<8x128xf32>
      %48 = vector.shape_cast %47 : vector<8x128xf32> to vector<1x8x128xf32>
      %cst_36 = arith.constant dense<0.000000e+00> : vector<8x128xf32>
      %49 = vector.multi_reduction <add>, %48, %cst_36 [0] : vector<1x8x128xf32> to vector<8x128xf32>
      %50 = arith.addf %arg6, %49 : vector<8x128xf32>
      %51 = arith.mulf %33, %36 : vector<8x128xf32>
      %52 = vector.shape_cast %51 : vector<8x128xf32> to vector<1x8x128xf32>
      %cst_37 = arith.constant dense<0.000000e+00> : vector<8x128xf32>
      %53 = vector.multi_reduction <add>, %52, %cst_37 [0] : vector<1x8x128xf32> to vector<8x128xf32>
      %54 = arith.addf %arg7, %53 : vector<8x128xf32>
      %55 = vector.shape_cast %33 : vector<8x128xf32> to vector<1x8x128xf32>
      %cst_38 = arith.constant dense<0.000000e+00> : vector<8x128xf32>
      %56 = vector.multi_reduction <add>, %55, %cst_38 [0] : vector<1x8x128xf32> to vector<8x128xf32>
      %57 = arith.addf %arg8, %56 : vector<8x128xf32>
      %58 = vector.shape_cast %36 : vector<8x128xf32> to vector<1x8x128xf32>
      %cst_39 = arith.constant dense<0.000000e+00> : vector<8x128xf32>
      %59 = vector.multi_reduction <add>, %58, %cst_39 [0] : vector<1x8x128xf32> to vector<8x128xf32>
      %60 = arith.addf %arg9, %59 : vector<8x128xf32>
      scf.yield %50, %54, %57, %60 : vector<8x128xf32>, vector<8x128xf32>, vector<8x128xf32>, vector<8x128xf32>
    }
    %c2_i32_2 = arith.constant 2 : i32
    %c0 = arith.constant 0 : index
    %c0_3 = arith.constant 0 : index
    %c0_4 = arith.constant 0 : index
    %c0_5 = arith.constant 0 : index
    %6 = vector.load %arg4[%c0, %c0_3, %c0_4, %c0_5] : memref<1x4x8x128xf32, #tpu.memory_space<vmem>>, vector<1x1x8x128xf32>
    %7 = vector.shape_cast %6 : vector<1x1x8x128xf32> to vector<8x128xf32>
    %8 = arith.addf %7, %5#0 : vector<8x128xf32>
    %c0_6 = arith.constant 0 : index
    %c0_7 = arith.constant 0 : index
    %c0_8 = arith.constant 0 : index
    %c0_9 = arith.constant 0 : index
    %9 = vector.load %arg4[%c0_6, %c0_7, %c0_8, %c0_9] : memref<1x4x8x128xf32, #tpu.memory_space<vmem>>, vector<1x1x8x128xf32>
    %10 = vector.shape_cast %9 : vector<1x1x8x128xf32> to vector<8x128xf32>
    %11 = vector.shape_cast %8 : vector<8x128xf32> to vector<1x1x8x128xf32>
    tpu.vector_store %arg4[%c0_6, %c0_7, %c0_8, %c0_9], %11 {strides = array<i32>} : memref<1x4x8x128xf32, #tpu.memory_space<vmem>>, vector<1x1x8x128xf32>,
    %c0_10 = arith.constant 0 : index
    %c1 = arith.constant 1 : index
    %c0_11 = arith.constant 0 : index
    %c0_12 = arith.constant 0 : index
    %12 = vector.load %arg4[%c0_10, %c1, %c0_11, %c0_12] : memref<1x4x8x128xf32, #tpu.memory_space<vmem>>, vector<1x1x8x128xf32>
    %13 = vector.shape_cast %12 : vector<1x1x8x128xf32> to vector<8x128xf32>
    %14 = arith.addf %13, %5#1 : vector<8x128xf32>
    %c0_13 = arith.constant 0 : index
    %c1_14 = arith.constant 1 : index
    %c0_15 = arith.constant 0 : index
    %c0_16 = arith.constant 0 : index
    %15 = vector.load %arg4[%c0_13, %c1_14, %c0_15, %c0_16] : memref<1x4x8x128xf32, #tpu.memory_space<vmem>>, vector<1x1x8x128xf32>
    %16 = vector.shape_cast %15 : vector<1x1x8x128xf32> to vector<8x128xf32>
    %17 = vector.shape_cast %14 : vector<8x128xf32> to vector<1x1x8x128xf32>
    tpu.vector_store %arg4[%c0_13, %c1_14, %c0_15, %c0_16], %17 {strides = array<i32>} : memref<1x4x8x128xf32, #tpu.memory_space<vmem>>, vector<1x1x8x128xf32>,
    %c0_17 = arith.constant 0 : index
    %c2 = arith.constant 2 : index
    %c0_18 = arith.constant 0 : index
    %c0_19 = arith.constant 0 : index
    %18 = vector.load %arg4[%c0_17, %c2, %c0_18, %c0_19] : memref<1x4x8x128xf32, #tpu.memory_space<vmem>>, vector<1x1x8x128xf32>
    %19 = vector.shape_cast %18 : vector<1x1x8x128xf32> to vector<8x128xf32>
    %20 = arith.addf %19, %5#2 : vector<8x128xf32>
    %c0_20 = arith.constant 0 : index
    %c2_21 = arith.constant 2 : index
    %c0_22 = arith.constant 0 : index
    %c0_23 = arith.constant 0 : index
    %21 = vector.load %arg4[%c0_20, %c2_21, %c0_22, %c0_23] : memref<1x4x8x128xf32, #tpu.memory_space<vmem>>, vector<1x1x8x128xf32>
    %22 = vector.shape_cast %21 : vector<1x1x8x128xf32> to vector<8x128xf32>
    %23 = vector.shape_cast %20 : vector<8x128xf32> to vector<1x1x8x128xf32>
    tpu.vector_store %arg4[%c0_20, %c2_21, %c0_22, %c0_23], %23 {strides = array<i32>} : memref<1x4x8x128xf32, #tpu.memory_space<vmem>>, vector<1x1x8x128xf32>,
    %c0_24 = arith.constant 0 : index
    %c3 = arith.constant 3 : index
    %c0_25 = arith.constant 0 : index
    %c0_26 = arith.constant 0 : index
    %24 = vector.load %arg4[%c0_24, %c3, %c0_25, %c0_26] : memref<1x4x8x128xf32, #tpu.memory_space<vmem>>, vector<1x1x8x128xf32>
    %25 = vector.shape_cast %24 : vector<1x1x8x128xf32> to vector<8x128xf32>
    %26 = arith.addf %25, %5#3 : vector<8x128xf32>
    %c0_27 = arith.constant 0 : index
    %c3_28 = arith.constant 3 : index
    %c0_29 = arith.constant 0 : index
    %c0_30 = arith.constant 0 : index
    %27 = vector.load %arg4[%c0_27, %c3_28, %c0_29, %c0_30] : memref<1x4x8x128xf32, #tpu.memory_space<vmem>>, vector<1x1x8x128xf32>
    %28 = vector.shape_cast %27 : vector<1x1x8x128xf32> to vector<8x128xf32>
    %29 = vector.shape_cast %26 : vector<8x128xf32> to vector<1x1x8x128xf32>
    tpu.vector_store %arg4[%c0_27, %c3_28, %c0_29, %c0_30], %29 {strides = array<i32>} : memref<1x4x8x128xf32, #tpu.memory_space<vmem>>, vector<1x1x8x128xf32>,
    return
  }
  func.func @transform_0(%arg0: i32, %arg1: i32) -> (i32, i32) {
    %c1_i32 = arith.constant 1 : i32
    %0 = arith.muli %arg0, %c1_i32 : i32
    %1 = arith.addi %0, %arg1 : i32
    %c0_i32 = arith.constant 0 : i32
    %c0_i32_0 = arith.constant 0 : i32
    return %1, %c0_i32 : i32, i32
  }
  func.func @transform_1(%arg0: i32, %arg1: i32) -> (i32, i32) {
    %c1_i32 = arith.constant 1 : i32
    %0 = arith.muli %arg0, %c1_i32 : i32
    %1 = arith.addi %0, %arg1 : i32
    %c0_i32 = arith.constant 0 : i32
    %c0_i32_0 = arith.constant 0 : i32
    return %1, %c0_i32 : i32, i32
  }
  func.func @transform_2(%arg0: i32, %arg1: i32) -> (i32, i32, i32, i32) {
    %c0_i32 = arith.constant 0 : i32
    %c0_i32_0 = arith.constant 0 : i32
    %c0_i32_1 = arith.constant 0 : i32
    %c0_i32_2 = arith.constant 0 : i32
    return %arg0, %c0_i32, %c0_i32_0, %c0_i32_1 : i32, i32, i32, i32
  }
}

</mosaic_0001>

<bundles_post_ra>
// kernel: combined_loss.1
= control target key start
LH: loop header
LB: loop body
LE: loop exit
PB: predicated region body
PF: predicated region fallthrough
CT: control target
= control target key end

     0   :  { %v246_v0 = vmov 0.0   ;;  %v226_v1 = vmov 0.0   ;;  %v230_v2 = vmov 0.0   ;;  %v234_v3 = vmov 0.0   ;;  %s274_s17 = smov 0   ;;  %s313_s0 = inlined_call_operand.vmem [shape: f32[16,128], index: 0, kind: input, shape index: {}]   ;;  %s314_s1 = inlined_call_operand.vmem [shape: bf16[16,128], index: 1, kind: input, shape index: {}]   ;;  %s315_s2 = inlined_call_operand.vmem [shape: f32[1,4,8,128], index: 2, kind: output, shape index: {}]  }
   0x1   :  { %59 = vst [vmem:[%s315_s2] sm:$0xff] %v246_v0  ;;  %60 = vst [vmem:[%s315_s2 + $0x8] sm:$0xff] %v246_v0  ;;  %v238_v4 = vmov 0.0  }
   0x2   :  { %61 = vst [vmem:[%s315_s2 + $0x10] sm:$0xff] %v246_v0  ;;  %62 = vst [vmem:[%s315_s2 + $0x18] sm:$0xff] %v246_v0 }
   0x3 LB: > { %s153_s18 = sshll.u32 %s244_s17, 3  ;;  %s68_s17 = sadd.s32 1, %s244_s17   ;;  %s244_s17 = sphi %s274_s17, %s68_s17   ;;  %v240_v4 = vphi %v238_v4, %v239_v4   ;;  %v236_v3 = vphi %v234_v3, %v235_v3   ;;  %v232_v2 = vphi %v230_v2, %v231_v2   ;;  %v228_v1 = vphi %v226_v1, %v227_v1  }
   0x4   : > { %s74_s21 = scalar_lea.vmem %s313_s0, %s153_s18  ;;  %s76_s22 = sshra.s32 %s153_s18, 3 }
   0x5   : > { %v75_v5 = vld [vmem:[%s74_s21] sm:$0xff]  ;;  %s154_s23 = sshll.u32 %s76_s22, 2  ;;  %p65_p0 = scmp.ge.s32.totalorder %s68_s17, 2  }
   0x6   : > { %s79_s26 = scalar_lea.vmem %s314_s1, %s154_s23  ;;  %202 = vlog2.f32 %v75_v5  ;;  %v85_v6 = vsub.f32 1.0, %v75_v5  ;;  %v98_v7 = vadd.f32 %v232_v2, %v75_v5  }
   0x7   : > { %v80_v8 = vld [vmem:[%s79_s26] sm:$0xf] }
   0x8   : > { %v81_v9 = vunpack.c.l.bf16 %v80_v8  ;;  %204 = vlog2.f32 %v85_v6  ;;  %v231_v2 = vmov %v98_v7   ;;  %v101_v23 = vld [vmem:[%s315_s2] sm:$0xff] (%p65_p0)  ;;  %v155_v24 = vld [vmem:[%s315_s2 + $0x8] sm:$0xff] (%p65_p0) }
   0x9   :  { %v157_v25 = vld [vmem:[%s315_s2 + $0x10] sm:$0xff] (%p65_p0)  ;;  %v159_v29 = vld [vmem:[%s315_s2 + $0x18] sm:$0xff] (%p65_p0) }
   0xa   : > { %v94_v10 = vmul.f32 %v81_v9, %v75_v5  ;;  %v100_v11 = vadd.f32 %v228_v1, %v81_v9   ;;  %v110_v28 = vadd.f32 (%p65_p0), %v157_v25, %v98_v7 }
   0xc   : > { %v96_v12 = vadd.f32 %v236_v3, %v94_v10   ;;  %v227_v1 = vmov %v100_v11   ;;  %v114_v30 = vadd.f32 (%p65_p0), %v159_v29, %v100_v11  ;;  %158 = vst [vmem:[%s315_s2 + $0x10] sm:$0xff] (%p65_p0), %v110_v28 }
   0xe   : > { %v235_v3 = vmov %v96_v12   ;;  %v106_v27 = vadd.f32 (%p65_p0), %v155_v24, %v96_v12  ;;  %160 = vst [vmem:[%s315_s2 + $0x18] sm:$0xff] (%p65_p0), %v114_v30 }
  0x10   : > { %v203_v13 = vpop.eup %202  ;;  %156 = vst [vmem:[%s315_s2 + $0x8] sm:$0xff] (%p65_p0), %v106_v27 }
  0x11   : > { %v83_v14 = vmul.f32 0.6931472, %v203_v13 }
  0x12   : > { %v205_v15 = vpop.eup %204 }
  0x13   : > { %v84_v16 = vmax.f32 %v83_v14, -100.0  ;;  %v87_v17 = vmul.f32 0.6931472, %v205_v15 }
  0x15   : > { %v88_v18 = vmax.f32 %v87_v17, -100.0 }
  0x17   : > { %v89_v19 = vsub.f32 %v84_v16, %v88_v18 }
  0x19   : > { %v90_v20 = vmul.f32 %v89_v19, %v81_v9  ;;  %67 = sbr.rel (!%p65_p0) target bundleno = 3 (0x3), region = 50 }
  0x1b   : > { %v91_v21 = vadd.f32 %v90_v20, %v88_v18 }
  0x1d   : > { %v93_v22 = vadd.f32 %v240_v4, %v91_v21  }
  0x1f   : > { %v239_v4 = vmov %v93_v22   ;;  %v102_v26 = vadd.f32 (%p65_p0), %v101_v23, %v93_v22 }
  0x21   :  { %103 = vst [vmem:[%s315_s2] sm:$0xff] %v102_v26 }

</bundles_post_ra>
